<compile_context>
chip_gen: v5e
topology: v5e:2x2
jax: 0.10.0
libtpu: 0.0.40
codegen_flags: <defaults>
</compile_context>

<pallas_src>
import functools

import jax
import jax.numpy as jnp
from jax.experimental import pallas as pl
from jax.experimental.pallas import tpu as pltpu

LN_EPS = 1e-5  # torch.nn.LayerNorm default


def _round_up(n, m):
    return ((n + m - 1) // m) * m


def _vmem_limit_bytes():
    """Generation-aware scoped-VMEM limit (v7x: 64 MiB physical, v5e/v6e: 128)."""
    try:
        cap = int(pltpu.get_tpu_info().vmem_capacity_bytes)
    except Exception:
        return 32 * 1024 * 1024
    if cap <= 64 * 1024 * 1024:
        return 48 * 1024 * 1024      # v7x-class: leave headroom under 64 MiB
    return 80 * 1024 * 1024          # v5e / v6e: 128 MiB physical VMEM


def _pick_point_tile(P, hp):
    """Point-tile (lane) size; big tiles amortize the ~0.35us per-step overhead."""
    if hp <= 64:
        target = 4096
    elif hp <= 256:
        target = 2048
    else:
        target = 1024
    return min(_round_up(P, 128), target)   # always a multiple of 128


def _layer_norm_feat(v, gamma, beta, true_n, n_pad):
    """LayerNorm over the feature (sublane) axis 0 of v: [feat_pad, cols].

    Padded feature rows of v are exactly zero (zero weight rows / zero bias),
    so the row sums equal the true-row sums; the centered sum-of-squares only
    needs the known n_pad * mu^2 contribution removed.  gamma/beta are zero on
    padded rows, so padded rows stay exactly zero on output.
    """
    inv_n = 1.0 / float(true_n)
    mu = jnp.sum(v, axis=0, keepdims=True) * inv_n          # [1, cols]
    d = v - mu
    ss = jnp.sum(d * d, axis=0, keepdims=True)
    if n_pad:
        ss = ss - float(n_pad) * (mu * mu)                  # remove padded rows
    var = ss * inv_n
    return d * jax.lax.rsqrt(var + LN_EPS) * gamma + beta


def _pointnet_kernel(num_layers, h2, h2p, hdim, hp, n_points,
                     x_ref, w_first_ref, w_rest_ref, vec_ref,
                     out_ref, gmax_ref):
    """grid = (batch "parallel", point_tile "arbitrary").

    x_ref      : [1, F, tp]        f32  one point tile (feature-major)
    w_first_ref: [h2p, F]          bf16 layer-0 first Linear, transposed
    w_rest_ref : [2L+1, hp, hp]    bf16 remaining Linears + global transform (W^T)
    vec_ref    : [4L+4, hp, 1]     f32  bias / LN gamma / LN beta columns
    out_ref    : [1, hp, 1]        f32
    gmax_ref   : [hp, 1]           f32  VMEM scratch (running max over tiles)
    """
    t = pl.program_id(1)
    tp = x_ref.shape[-1]

    @pl.when(t == 0)
    def _init():
        gmax_ref[...] = jnp.full(gmax_ref.shape, -jnp.inf, gmax_ref.dtype)

    h = x_ref[0]                                            # [F, tp] f32

    # --- per-point MLP: Linear -> LayerNorm -> ReLU -> Dropout(id) -> Linear
    for layer in range(num_layers):
        if layer == 0:
            w1 = w_first_ref[...]                           # [h2p, F]
        else:
            w1 = w_rest_ref[2 * layer - 1][:h2p, :]         # [h2p, hp]
        w2 = w_rest_ref[2 * layer][:, :h2p]                 # [hp, h2p]
        b1 = vec_ref[4 * layer + 0][:h2p]                   # [h2p, 1]
        g1 = vec_ref[4 * layer + 1][:h2p]
        be1 = vec_ref[4 * layer + 2][:h2p]
        b2 = vec_ref[4 * layer + 3]                         # [hp, 1]

        z = jnp.dot(w1, h.astype(jnp.bfloat16),
                    preferred_element_type=jnp.float32) + b1        # [h2p, tp]
        z = _layer_norm_feat(z, g1, be1, h2, h2p - h2)
        z = jnp.maximum(z, 0.0)
        # Dropout: identity in eval mode
        h = jnp.dot(w2, z.astype(jnp.bfloat16),
                    preferred_element_type=jnp.float32) + b2        # [hp, tp]

    # --- permutation-invariant max over points (lanes); mask host-side padding
    if n_points % tp != 0:
        pidx = t * tp + jax.lax.broadcasted_iota(jnp.int32, (1, tp), 1)
        h = jnp.where(pidx < n_points, h, -jnp.inf)
    gmax_ref[...] = jnp.maximum(gmax_ref[...],
                                jnp.max(h, axis=1, keepdims=True))

    # --- finalize: global transform on the last point tile
    @pl.when(t == pl.num_programs(1) - 1)
    def _finalize():
        wg1 = w_rest_ref[2 * num_layers - 1]                # [hp, hp]
        wg2 = w_rest_ref[2 * num_layers]
        bg1 = vec_ref[4 * num_layers + 0]
        gg = vec_ref[4 * num_layers + 1]
        beg = vec_ref[4 * num_layers + 2]
        bg2 = vec_ref[4 * num_layers + 3]

        # Broadcast the pooled [hp,1] vector across 128 lanes so both global
        # matmuls are plain [hp,hp] x [hp,128] MXU ops (no N=1 mat-vec path).
        g = jnp.broadcast_to(gmax_ref[...], (hp, 128)).astype(jnp.bfloat16)
        y = jnp.dot(wg1, g, preferred_element_type=jnp.float32) + bg1
        y = _layer_norm_feat(y, gg, beg, hdim, hp - hdim)
        y = jnp.maximum(y, 0.0)
        # Dropout: identity in eval mode
        y = jnp.dot(wg2, y.astype(jnp.bfloat16),
                    preferred_element_type=jnp.float32) + bg2
        out_ref[...] = y[:, :1].reshape(out_ref.shape)


def pointnet_encoder(x, packed_params, hidden_dim, num_layers, tile_points=None):
    """x: [B, P, F] f32; packed_params = (w_first, w_rest, vecs) from pack_params."""
    w_first, w_rest, vecs = packed_params
    B, P, F = x.shape
    hp = w_rest.shape[-1]
    h2 = hidden_dim // 2
    h2p = _round_up(max(h2, 1), 8)

    if tile_points is not None:
        tp = _round_up(int(tile_points), 128)
    else:
        tp = _pick_point_tile(P, hp)
    p_pad = _round_up(P, tp)

    # Feature-major input [B, F, P_pad]: points on the 128-wide lane axis
    # (lane-dense for any hidden_dim) and contiguous tp*4-byte DMA rows.
    xt = jnp.swapaxes(x, 1, 2)
    if p_pad != P:
        xt = jnp.pad(xt, ((0, 0), (0, 0), (0, p_pad - P)))

    grid = (B, p_pad // tp)
    kernel = functools.partial(_pointnet_kernel, num_layers, h2, h2p,
                               hidden_dim, hp, P)

    # Constant-index parameter slabs: single-buffer them once the second
    # pipeline buffer would cost real VMEM (matters most under v7x's 64 MiB).
    big_params = int(w_rest.size) * w_rest.dtype.itemsize >= (2 << 20)

    def _param_spec(shape, index_map):
        if big_params:
            return pl.BlockSpec(shape, index_map, pipeline_mode=pl.Buffered(1))
        return pl.BlockSpec(shape, index_map)

    out = pl.pallas_call(
        kernel,
        out_shape=jax.ShapeDtypeStruct((B, hp, 1), jnp.float32),
        grid=grid,
        in_specs=[
            # one point-tile of one batch element per grid step
            pl.BlockSpec((1, F, tp), lambda b, t: (b, 0, t)),
            # parameters: full-array blocks, constant index -> stay resident
            _param_spec(w_first.shape, lambda b, t: (0, 0)),
            _param_spec(w_rest.shape, lambda b, t: (0, 0, 0)),
            _param_spec(vecs.shape, lambda b, t: (0, 0, 0)),
        ],
        # NOTE: correctness of the finalize/writeback relies on the point axis
        # being the innermost grid axis and the output block index being
        # constant in t (output stays resident, written once on the last tile).
        out_specs=pl.BlockSpec((1, hp, 1), lambda b, t: (b, 0, 0)),
        scratch_shapes=[pltpu.VMEM((hp, 1), jnp.float32)],
        compiler_params=pltpu.CompilerParams(
            dimension_semantics=("parallel", "arbitrary"),
            vmem_limit_bytes=_vmem_limit_bytes(),
        ),
    )(xt, w_first, w_rest, vecs)

    return out.reshape(B, hp)[:, :hidden_dim]


# ----------------------------------------------------------------------------
# parameter construction / packing
# ----------------------------------------------------------------------------
def init_params(key, input_dim=3, hidden_dim=32, num_layers=3):
    """Deterministic synthetic parameters matching the module's shapes (f32)."""
    h2 = hidden_dim // 2
    params = []
    keys = iter(jax.random.split(key, 4 * num_layers + 4))

    def lin(k, fan_in, fan_out):
        return jax.random.normal(k, (fan_in, fan_out), jnp.float32) / jnp.sqrt(fan_in)

    in_dim = input_dim
    for _ in range(num_layers):
        w1 = lin(next(keys), in_dim, h2)
        b1 = 0.01 * jax.random.normal(next(keys), (1, h2), jnp.float32)
        ln_g = jnp.ones((1, h2), jnp.float32)
        ln_b = jnp.zeros((1, h2), jnp.float32)
        w2 = lin(next(keys), h2, hidden_dim)
        b2 = 0.01 * jax.random.normal(next(keys), (1, hidden_dim), jnp.float32)
        params += [w1, b1, ln_g, ln_b, w2, b2]
        in_dim = hidden_dim

    wg1 = lin(next(keys), hidden_dim, hidden_dim)
    bg1 = 0.01 * jax.random.normal(next(keys), (1, hidden_dim), jnp.float32)
    gg = jnp.ones((1, hidden_dim), jnp.float32)
    bg = jnp.zeros((1, hidden_dim), jnp.float32)
    wg2 = lin(next(keys), hidden_dim, hidden_dim)
    bg2 = 0.01 * jax.random.normal(next(keys), (1, hidden_dim), jnp.float32)
    params += [wg1, bg1, gg, bg, wg2, bg2]
    return params


def pack_params(params, input_dim, hidden_dim, num_layers):
    """Pack the flat torch-style param list into feature-major (W^T) slabs."""
    H = hidden_dim
    h2 = H // 2
    hp = _round_up(H, 8)
    h2p = _round_up(max(h2, 1), 8)

    def padT(w, rows, cols):
        wt = jnp.asarray(w, jnp.float32).T          # store W^T
        out = jnp.zeros((rows, cols), jnp.float32)
        return out.at[:wt.shape[0], :wt.shape[1]].set(wt)

    def col(v, rows):
        v = jnp.asarray(v, jnp.float32).reshape(-1)
        out = jnp.zeros((rows, 1), jnp.float32)
        return out.at[:v.shape[0], 0].set(v)

    w_first = None
    w_rest, vec_cols = [], []
    idx = 0
    for layer in range(num_layers):
        w1, b1, g1, be1, w2, b2 = params[idx:idx + 6]
        idx += 6
        if layer == 0:
            w_first = padT(w1, h2p, input_dim)       # [h2p, F]
        else:
            w_rest.append(padT(w1, hp, hp))          # true block [h2, H]
        w_rest.append(padT(w2, hp, hp))              # true block [H, h2]
        vec_cols += [col(b1, hp), col(g1, hp), col(be1, hp), col(b2, hp)]

    wg1, bg1, gg, beg, wg2, bg2 = params[idx:idx + 6]
    w_rest += [padT(wg1, hp, hp), padT(wg2, hp, hp)]
    vec_cols += [col(bg1, hp), col(gg, hp), col(beg, hp), col(bg2, hp)]

    w_first = w_first.astype(jnp.bfloat16)
    w_rest = jnp.stack(w_rest).astype(jnp.bfloat16)  # [2L+1, hp, hp]
    vecs = jnp.stack(vec_cols)                       # [4L+4, hp, 1] f32
    return w_first, w_rest, vecs


# ----------------------------------------------------------------------------
# pure-JAX references
# ----------------------------------------------------------------------------
def _layer_norm_ref(v, gamma, beta):
    mu = jnp.mean(v, axis=-1, keepdims=True)
    var = jnp.mean((v - mu) ** 2, axis=-1, keepdims=True)
    return (v - mu) * jax.lax.rsqrt(var + LN_EPS) * gamma + beta


def pointnet_encoder_ref(x, params, num_layers=3, bf16_matmul=False):
    """Pure-JAX reference.  bf16_matmul=True mirrors the kernel's matmul dtype."""
    def mm(a, w):
        if bf16_matmul:
            a = a.astype(jnp.bfloat16)
            w = w.astype(jnp.bfloat16)
        return jnp.dot(a, w, preferred_element_type=jnp.float32)

    B, P, F = x.shape
    h = x.reshape(B * P, F)
    idx = 0
    for _ in range(num_layers):
        w1, b1, g1, be1, w2, b2 = params[idx:idx + 6]
        idx += 6
        h = mm(h, w1) + b1
        h = _layer_norm_ref(h, g1, be1)
        h = jnp.maximum(h, 0.0)
        h = mm(h, w2) + b2
    g = jnp.max(h.reshape(B, P, -1), axis=1)
    wg1, bg1, gg, beg, wg2, bg2 = params[idx:idx + 6]
    g = mm(g, wg1) + bg1
    g = _layer_norm_ref(g, gg, beg)
    g = jnp.maximum(g, 0.0)
    g = mm(g, wg2) + bg2
    return g


if __name__ == "__main__":
    B, P, F = 2, 200, 3         # batch, points, input_dim
    H, NUM_LAYERS = 32, 3       # hidden_dim, num_layers

    key = jax.random.PRNGKey(0)
    k_x, k_p = jax.random.split(key)
    x = jax.random.normal(k_x, (B, P, F), jnp.float32)
    params = init_params(k_p, input_dim=F, hidden_dim=H, num_layers=NUM_LAYERS)
    packed = pack_params(params, input_dim=F, hidden_dim=H, num_layers=NUM_LAYERS)

    # tile_points=128 with P=200 -> 2 point tiles per batch element, the second
    # partially padded: exercises the running-max init/finalize path AND the
    # ragged-P lane masking.
    out = pointnet_encoder(x, packed, hidden_dim=H, num_layers=NUM_LAYERS,
                           tile_points=128)
    out = jax.block_until_ready(out)

    # default (auto) tile: single 256-lane tile per batch element
    out_default = pointnet_encoder(x, packed, hidden_dim=H, num_layers=NUM_LAYERS)
    out_default = jax.block_until_ready(out_default)

    ref_mixed = pointnet_encoder_ref(x, params, NUM_LAYERS, bf16_matmul=True)
    ref_f32 = pointnet_encoder_ref(x, params, NUM_LAYERS, bf16_matmul=False)

    assert out.shape == (B, H)
    assert bool(jnp.all(jnp.isfinite(out)))
    # tiling must not change the result
    assert bool(jnp.allclose(out_default, out, rtol=1e-4, atol=1e-4))
    # same bf16-matmul semantics as the kernel (contraction order differs only)
    assert bool(jnp.allclose(out, ref_mixed, rtol=2e-2, atol=2e-2))
    # full-f32 module reference (tolerance covers bf16 matmuls)
    assert bool(jnp.allclose(out, ref_f32, rtol=5e-2, atol=5e-2))

    print("KERNEL_OK")
</pallas_src>

<mosaic_0001>
module attributes {stable_mosaic.version = 11 : i64} {
  func.func @_pointnet_kernel(%arg0: i32, %arg1: i32, %arg2: memref<1x3x128xf32, #tpu.memory_space<vmem>>, %arg3: memref<16x3xbf16, #tpu.memory_space<vmem>>, %arg4: memref<7x32x32xbf16, #tpu.memory_space<vmem>>, %arg5: memref<16x32x1xf32, #tpu.memory_space<vmem>>, %arg6: memref<1x32x1xf32, #tpu.memory_space<vmem>>, %arg7: memref<32x1xf32, #tpu.memory_space<vmem>>) attributes {dimension_semantics = [#tpu.dimension_semantics<parallel>, #tpu.dimension_semantics<arbitrary>], iteration_bounds = array<i64: 2, 2>, scalar_prefetch = 0 : i64, scratch_operands = 1 : i64, tpu.core_type = #tpu.core_type<tc>, window_params = [{transform_indices = @transform_0, window_bounds = array<i64: 1, 3, 128>}, {pipeline_mode = #tpu.pipeline_mode<synchronous>, transform_indices = @transform_1, window_bounds = array<i64: 16, 3>}, {pipeline_mode = #tpu.pipeline_mode<synchronous>, transform_indices = @transform_2, window_bounds = array<i64: 7, 32, 32>}, {pipeline_mode = #tpu.pipeline_mode<synchronous>, transform_indices = @transform_3, window_bounds = array<i64: 16, 32, 1>}, {transform_indices = @transform_4, window_bounds = array<i64: 1, 32, 1>}]} {
    %c0_i32 = arith.constant 0 : i32
    %0 = arith.cmpi eq, %arg1, %c0_i32 : i32
    %1 = arith.extui %0 : i1 to i32
    %c0_i32_0 = arith.constant 0 : i32
    %2 = arith.cmpi ne, %1, %c0_i32_0 : i32
    scf.if %2 {
      %cst_75 = arith.constant 0xFF800000 : f32
      %162 = vector.broadcast %cst_75 : f32 to vector<32x1xf32>
      %c0_76 = arith.constant 0 : index
      %c0_77 = arith.constant 0 : index
      %163 = vector.load %arg7[%c0_76, %c0_77] : memref<32x1xf32, #tpu.memory_space<vmem>>, vector<32x1xf32>
      tpu.vector_store %arg7[%c0_76, %c0_77], %162 {strides = array<i32>} : memref<32x1xf32, #tpu.memory_space<vmem>>, vector<32x1xf32>,
    } else {
    }
    %c0 = arith.constant 0 : index
    %c0_1 = arith.constant 0 : index
    %c0_2 = arith.constant 0 : index
    %3 = vector.load %arg2[%c0, %c0_1, %c0_2] : memref<1x3x128xf32, #tpu.memory_space<vmem>>, vector<1x3x128xf32>
    %4 = vector.shape_cast %3 : vector<1x3x128xf32> to vector<3x128xf32>
    %c0_3 = arith.constant 0 : index
    %c0_4 = arith.constant 0 : index
    %5 = vector.load %arg3[%c0_3, %c0_4] : memref<16x3xbf16, #tpu.memory_space<vmem>>, vector<16x3xbf16>
    %c0_5 = arith.constant 0 : index
    %c0_6 = arith.constant 0 : index
    %c0_7 = arith.constant 0 : index
    %6 = vector.load %arg4[%c0_5, %c0_6, %c0_7] : memref<7x32x32xbf16, #tpu.memory_space<vmem>>, vector<1x32x32xbf16>
    %7 = vector.shape_cast %6 : vector<1x32x32xbf16> to vector<32x32xbf16>
    %8 = vector.extract_strided_slice %7 {offsets = [0, 0], sizes = [32, 16], strides = [1, 1]} : vector<32x32xbf16> to vector<32x16xbf16>
    %c0_8 = arith.constant 0 : index
    %c0_9 = arith.constant 0 : index
    %c0_10 = arith.constant 0 : index
    %9 = vector.load %arg5[%c0_8, %c0_9, %c0_10] : memref<16x32x1xf32, #tpu.memory_space<vmem>>, vector<1x32x1xf32>
    %10 = vector.shape_cast %9 : vector<1x32x1xf32> to vector<32x1xf32>
    %11 = vector.extract_strided_slice %10 {offsets = [0, 0], sizes = [16, 1], strides = [1, 1]} : vector<32x1xf32> to vector<16x1xf32>
    %c1 = arith.constant 1 : index
    %c0_11 = arith.constant 0 : index
    %c0_12 = arith.constant 0 : index
    %12 = vector.load %arg5[%c1, %c0_11, %c0_12] : memref<16x32x1xf32, #tpu.memory_space<vmem>>, vector<1x32x1xf32>
    %13 = vector.shape_cast %12 : vector<1x32x1xf32> to vector<32x1xf32>
    %14 = vector.extract_strided_slice %13 {offsets = [0, 0], sizes = [16, 1], strides = [1, 1]} : vector<32x1xf32> to vector<16x1xf32>
    %c2 = arith.constant 2 : index
    %c0_13 = arith.constant 0 : index
    %c0_14 = arith.constant 0 : index
    %15 = vector.load %arg5[%c2, %c0_13, %c0_14] : memref<16x32x1xf32, #tpu.memory_space<vmem>>, vector<1x32x1xf32>
    %16 = vector.shape_cast %15 : vector<1x32x1xf32> to vector<32x1xf32>
    %17 = vector.extract_strided_slice %16 {offsets = [0, 0], sizes = [16, 1], strides = [1, 1]} : vector<32x1xf32> to vector<16x1xf32>
    %c3 = arith.constant 3 : index
    %c0_15 = arith.constant 0 : index
    %c0_16 = arith.constant 0 : index
    %18 = vector.load %arg5[%c3, %c0_15, %c0_16] : memref<16x32x1xf32, #tpu.memory_space<vmem>>, vector<1x32x1xf32>
    %19 = vector.shape_cast %18 : vector<1x32x1xf32> to vector<32x1xf32>
    %20 = arith.truncf %4 : vector<3x128xf32> to vector<3x128xbf16>
    %cst = arith.constant dense<0.000000e+00> : vector<16x128xf32>
    %21 = tpu.matmul %5, %20, %cst {dimension_numbers = #tpu.dot_dimension_numbers<[1], [0], [0], [1], [0, 0, 1, 1], [], []>} : vector<16x3xbf16>, vector<3x128xbf16>, vector<16x128xf32> -> vector<16x128xf32>
    %22 = vector.broadcast %11 : vector<16x1xf32> to vector<16x128xf32>
    %23 = arith.addf %21, %22 : vector<16x128xf32>
    %cst_17 = arith.constant dense<0.000000e+00> : vector<128xf32>
    %24 = vector.multi_reduction <add>, %23, %cst_17 [0] : vector<16x128xf32> to vector<128xf32>
    %25 = vector.shape_cast %24 : vector<128xf32> to vector<1x128xf32>
    %cst_18 = arith.constant 6.250000e-02 : f32
    %26 = vector.broadcast %cst_18 : f32 to vector<1x128xf32>
    %27 = arith.mulf %25, %26 : vector<1x128xf32>
    %28 = vector.broadcast %27 : vector<1x128xf32> to vector<16x128xf32>
    %29 = arith.subf %23, %28 : vector<16x128xf32>
    %30 = arith.mulf %29, %29 : vector<16x128xf32>
    %cst_19 = arith.constant dense<0.000000e+00> : vector<128xf32>
    %31 = vector.multi_reduction <add>, %30, %cst_19 [0] : vector<16x128xf32> to vector<128xf32>
    %32 = vector.shape_cast %31 : vector<128xf32> to vector<1x128xf32>
    %cst_20 = arith.constant 6.250000e-02 : f32
    %33 = vector.broadcast %cst_20 : f32 to vector<1x128xf32>
    %34 = arith.mulf %32, %33 : vector<1x128xf32>
    %cst_21 = arith.constant 9.99999974E-6 : f32
    %35 = vector.broadcast %cst_21 : f32 to vector<1x128xf32>
    %36 = arith.addf %34, %35 : vector<1x128xf32>
    %37 = math.rsqrt %36 : vector<1x128xf32>
    %38 = vector.broadcast %37 : vector<1x128xf32> to vector<16x128xf32>
    %39 = arith.mulf %29, %38 : vector<16x128xf32>
    %40 = vector.broadcast %14 : vector<16x1xf32> to vector<16x128xf32>
    %41 = arith.mulf %39, %40 : vector<16x128xf32>
    %42 = vector.broadcast %17 : vector<16x1xf32> to vector<16x128xf32>
    %43 = arith.addf %41, %42 : vector<16x128xf32>
    %cst_22 = arith.constant 0.000000e+00 : f32
    %44 = vector.broadcast %cst_22 : f32 to vector<16x128xf32>
    %45 = arith.maximumf %43, %44 : vector<16x128xf32>
    %46 = arith.truncf %45 : vector<16x128xf32> to vector<16x128xbf16>
    %cst_23 = arith.constant dense<0.000000e+00> : vector<32x128xf32>
    %47 = tpu.matmul %8, %46, %cst_23 {dimension_numbers = #tpu.dot_dimension_numbers<[1], [0], [0], [1], [0, 0, 1, 1], [], []>} : vector<32x16xbf16>, vector<16x128xbf16>, vector<32x128xf32> -> vector<32x128xf32>
    %48 = vector.broadcast %19 : vector<32x1xf32> to vector<32x128xf32>
    %49 = arith.addf %47, %48 : vector<32x128xf32>
    %c1_24 = arith.constant 1 : index
    %c0_25 = arith.constant 0 : index
    %c0_26 = arith.constant 0 : index
    %50 = vector.load %arg4[%c1_24, %c0_25, %c0_26] : memref<7x32x32xbf16, #tpu.memory_space<vmem>>, vector<1x32x32xbf16>
    %51 = vector.shape_cast %50 : vector<1x32x32xbf16> to vector<32x32xbf16>
    %52 = vector.extract_strided_slice %51 {offsets = [0, 0], sizes = [16, 32], strides = [1, 1]} : vector<32x32xbf16> to vector<16x32xbf16>
    %c2_27 = arith.constant 2 : index
    %c0_28 = arith.constant 0 : index
    %c0_29 = arith.constant 0 : index
    %53 = vector.load %arg4[%c2_27, %c0_28, %c0_29] : memref<7x32x32xbf16, #tpu.memory_space<vmem>>, vector<1x32x32xbf16>
    %54 = vector.shape_cast %53 : vector<1x32x32xbf16> to vector<32x32xbf16>
    %55 = vector.extract_strided_slice %54 {offsets = [0, 0], sizes = [32, 16], strides = [1, 1]} : vector<32x32xbf16> to vector<32x16xbf16>
    %c4 = arith.constant 4 : index
    %c0_30 = arith.constant 0 : index
    %c0_31 = arith.constant 0 : index
    %56 = vector.load %arg5[%c4, %c0_30, %c0_31] : memref<16x32x1xf32, #tpu.memory_space<vmem>>, vector<1x32x1xf32>
    %57 = vector.shape_cast %56 : vector<1x32x1xf32> to vector<32x1xf32>
    %58 = vector.extract_strided_slice %57 {offsets = [0, 0], sizes = [16, 1], strides = [1, 1]} : vector<32x1xf32> to vector<16x1xf32>
    %c5 = arith.constant 5 : index
    %c0_32 = arith.constant 0 : index
    %c0_33 = arith.constant 0 : index
    %59 = vector.load %arg5[%c5, %c0_32, %c0_33] : memref<16x32x1xf32, #tpu.memory_space<vmem>>, vector<1x32x1xf32>
    %60 = vector.shape_cast %59 : vector<1x32x1xf32> to vector<32x1xf32>
    %61 = vector.extract_strided_slice %60 {offsets = [0, 0], sizes = [16, 1], strides = [1, 1]} : vector<32x1xf32> to vector<16x1xf32>
    %c6 = arith.constant 6 : index
    %c0_34 = arith.constant 0 : index
    %c0_35 = arith.constant 0 : index
    %62 = vector.load %arg5[%c6, %c0_34, %c0_35] : memref<16x32x1xf32, #tpu.memory_space<vmem>>, vector<1x32x1xf32>
    %63 = vector.shape_cast %62 : vector<1x32x1xf32> to vector<32x1xf32>
    %64 = vector.extract_strided_slice %63 {offsets = [0, 0], sizes = [16, 1], strides = [1, 1]} : vector<32x1xf32> to vector<16x1xf32>
    %c7 = arith.constant 7 : index
    %c0_36 = arith.constant 0 : index
    %c0_37 = arith.constant 0 : index
    %65 = vector.load %arg5[%c7, %c0_36, %c0_37] : memref<16x32x1xf32, #tpu.memory_space<vmem>>, vector<1x32x1xf32>
    %66 = vector.shape_cast %65 : vector<1x32x1xf32> to vector<32x1xf32>
    %67 = arith.truncf %49 : vector<32x128xf32> to vector<32x128xbf16>
    %cst_38 = arith.constant dense<0.000000e+00> : vector<16x128xf32>
    %68 = tpu.matmul %52, %67, %cst_38 {dimension_numbers = #tpu.dot_dimension_numbers<[1], [0], [0], [1], [0, 0, 1, 1], [], []>} : vector<16x32xbf16>, vector<32x128xbf16>, vector<16x128xf32> -> vector<16x128xf32>
    %69 = vector.broadcast %58 : vector<16x1xf32> to vector<16x128xf32>
    %70 = arith.addf %68, %69 : vector<16x128xf32>
    %cst_39 = arith.constant dense<0.000000e+00> : vector<128xf32>
    %71 = vector.multi_reduction <add>, %70, %cst_39 [0] : vector<16x128xf32> to vector<128xf32>
    %72 = vector.shape_cast %71 : vector<128xf32> to vector<1x128xf32>
    %cst_40 = arith.constant 6.250000e-02 : f32
    %73 = vector.broadcast %cst_40 : f32 to vector<1x128xf32>
    %74 = arith.mulf %72, %73 : vector<1x128xf32>
    %75 = vector.broadcast %74 : vector<1x128xf32> to vector<16x128xf32>
    %76 = arith.subf %70, %75 : vector<16x128xf32>
    %77 = arith.mulf %76, %76 : vector<16x128xf32>
    %cst_41 = arith.constant dense<0.000000e+00> : vector<128xf32>
    %78 = vector.multi_reduction <add>, %77, %cst_41 [0] : vector<16x128xf32> to vector<128xf32>
    %79 = vector.shape_cast %78 : vector<128xf32> to vector<1x128xf32>
    %cst_42 = arith.constant 6.250000e-02 : f32
    %80 = vector.broadcast %cst_42 : f32 to vector<1x128xf32>
    %81 = arith.mulf %79, %80 : vector<1x128xf32>
    %cst_43 = arith.constant 9.99999974E-6 : f32
    %82 = vector.broadcast %cst_43 : f32 to vector<1x128xf32>
    %83 = arith.addf %81, %82 : vector<1x128xf32>
    %84 = math.rsqrt %83 : vector<1x128xf32>
    %85 = vector.broadcast %84 : vector<1x128xf32> to vector<16x128xf32>
    %86 = arith.mulf %76, %85 : vector<16x128xf32>
    %87 = vector.broadcast %61 : vector<16x1xf32> to vector<16x128xf32>
    %88 = arith.mulf %86, %87 : vector<16x128xf32>
    %89 = vector.broadcast %64 : vector<16x1xf32> to vector<16x128xf32>
    %90 = arith.addf %88, %89 : vector<16x128xf32>
    %cst_44 = arith.constant 0.000000e+00 : f32
    %91 = vector.broadcast %cst_44 : f32 to vector<16x128xf32>
    %92 = arith.maximumf %90, %91 : vector<16x128xf32>
    %93 = arith.truncf %92 : vector<16x128xf32> to vector<16x128xbf16>
    %cst_45 = arith.constant dense<0.000000e+00> : vector<32x128xf32>
    %94 = tpu.matmul %55, %93, %cst_45 {dimension_numbers = #tpu.dot_dimension_numbers<[1], [0], [0], [1], [0, 0, 1, 1], [], []>} : vector<32x16xbf16>, vector<16x128xbf16>, vector<32x128xf32> -> vector<32x128xf32>
    %95 = vector.broadcast %66 : vector<32x1xf32> to vector<32x128xf32>
    %96 = arith.addf %94, %95 : vector<32x128xf32>
    %c3_46 = arith.constant 3 : index
    %c0_47 = arith.constant 0 : index
    %c0_48 = arith.constant 0 : index
    %97 = vector.load %arg4[%c3_46, %c0_47, %c0_48] : memref<7x32x32xbf16, #tpu.memory_space<vmem>>, vector<1x32x32xbf16>
    %98 = vector.shape_cast %97 : vector<1x32x32xbf16> to vector<32x32xbf16>
    %99 = vector.extract_strided_slice %98 {offsets = [0, 0], sizes = [16, 32], strides = [1, 1]} : vector<32x32xbf16> to vector<16x32xbf16>
    %c4_49 = arith.constant 4 : index
    %c0_50 = arith.constant 0 : index
    %c0_51 = arith.constant 0 : index
    %100 = vector.load %arg4[%c4_49, %c0_50, %c0_51] : memref<7x32x32xbf16, #tpu.memory_space<vmem>>, vector<1x32x32xbf16>
    %101 = vector.shape_cast %100 : vector<1x32x32xbf16> to vector<32x32xbf16>
    %102 = vector.extract_strided_slice %101 {offsets = [0, 0], sizes = [32, 16], strides = [1, 1]} : vector<32x32xbf16> to vector<32x16xbf16>
    %c8 = arith.constant 8 : index
    %c0_52 = arith.constant 0 : index
    %c0_53 = arith.constant 0 : index
    %103 = vector.load %arg5[%c8, %c0_52, %c0_53] : memref<16x32x1xf32, #tpu.memory_space<vmem>>, vector<1x32x1xf32>
    %104 = vector.shape_cast %103 : vector<1x32x1xf32> to vector<32x1xf32>
    %105 = vector.extract_strided_slice %104 {offsets = [0, 0], sizes = [16, 1], strides = [1, 1]} : vector<32x1xf32> to vector<16x1xf32>
    %c9 = arith.constant 9 : index
    %c0_54 = arith.constant 0 : index
    %c0_55 = arith.constant 0 : index
    %106 = vector.load %arg5[%c9, %c0_54, %c0_55] : memref<16x32x1xf32, #tpu.memory_space<vmem>>, vector<1x32x1xf32>
    %107 = vector.shape_cast %106 : vector<1x32x1xf32> to vector<32x1xf32>
    %108 = vector.extract_strided_slice %107 {offsets = [0, 0], sizes = [16, 1], strides = [1, 1]} : vector<32x1xf32> to vector<16x1xf32>
    %c10 = arith.constant 10 : index
    %c0_56 = arith.constant 0 : index
    %c0_57 = arith.constant 0 : index
    %109 = vector.load %arg5[%c10, %c0_56, %c0_57] : memref<16x32x1xf32, #tpu.memory_space<vmem>>, vector<1x32x1xf32>
    %110 = vector.shape_cast %109 : vector<1x32x1xf32> to vector<32x1xf32>
    %111 = vector.extract_strided_slice %110 {offsets = [0, 0], sizes = [16, 1], strides = [1, 1]} : vector<32x1xf32> to vector<16x1xf32>
    %c11 = arith.constant 11 : index
    %c0_58 = arith.constant 0 : index
    %c0_59 = arith.constant 0 : index
    %112 = vector.load %arg5[%c11, %c0_58, %c0_59] : memref<16x32x1xf32, #tpu.memory_space<vmem>>, vector<1x32x1xf32>
    %113 = vector.shape_cast %112 : vector<1x32x1xf32> to vector<32x1xf32>
    %114 = arith.truncf %96 : vector<32x128xf32> to vector<32x128xbf16>
    %cst_60 = arith.constant dense<0.000000e+00> : vector<16x128xf32>
    %115 = tpu.matmul %99, %114, %cst_60 {dimension_numbers = #tpu.dot_dimension_numbers<[1], [0], [0], [1], [0, 0, 1, 1], [], []>} : vector<16x32xbf16>, vector<32x128xbf16>, vector<16x128xf32> -> vector<16x128xf32>
    %116 = vector.broadcast %105 : vector<16x1xf32> to vector<16x128xf32>
    %117 = arith.addf %115, %116 : vector<16x128xf32>
    %cst_61 = arith.constant dense<0.000000e+00> : vector<128xf32>
    %118 = vector.multi_reduction <add>, %117, %cst_61 [0] : vector<16x128xf32> to vector<128xf32>
    %119 = vector.shape_cast %118 : vector<128xf32> to vector<1x128xf32>
    %cst_62 = arith.constant 6.250000e-02 : f32
    %120 = vector.broadcast %cst_62 : f32 to vector<1x128xf32>
    %121 = arith.mulf %119, %120 : vector<1x128xf32>
    %122 = vector.broadcast %121 : vector<1x128xf32> to vector<16x128xf32>
    %123 = arith.subf %117, %122 : vector<16x128xf32>
    %124 = arith.mulf %123, %123 : vector<16x128xf32>
    %cst_63 = arith.constant dense<0.000000e+00> : vector<128xf32>
    %125 = vector.multi_reduction <add>, %124, %cst_63 [0] : vector<16x128xf32> to vector<128xf32>
    %126 = vector.shape_cast %125 : vector<128xf32> to vector<1x128xf32>
    %cst_64 = arith.constant 6.250000e-02 : f32
    %127 = vector.broadcast %cst_64 : f32 to vector<1x128xf32>
    %128 = arith.mulf %126, %127 : vector<1x128xf32>
    %cst_65 = arith.constant 9.99999974E-6 : f32
    %129 = vector.broadcast %cst_65 : f32 to vector<1x128xf32>
    %130 = arith.addf %128, %129 : vector<1x128xf32>
    %131 = math.rsqrt %130 : vector<1x128xf32>
    %132 = vector.broadcast %131 : vector<1x128xf32> to vector<16x128xf32>
    %133 = arith.mulf %123, %132 : vector<16x128xf32>
    %134 = vector.broadcast %108 : vector<16x1xf32> to vector<16x128xf32>
    %135 = arith.mulf %133, %134 : vector<16x128xf32>
    %136 = vector.broadcast %111 : vector<16x1xf32> to vector<16x128xf32>
    %137 = arith.addf %135, %136 : vector<16x128xf32>
    %cst_66 = arith.constant 0.000000e+00 : f32
    %138 = vector.broadcast %cst_66 : f32 to vector<16x128xf32>
    %139 = arith.maximumf %137, %138 : vector<16x128xf32>
    %140 = arith.truncf %139 : vector<16x128xf32> to vector<16x128xbf16>
    %cst_67 = arith.constant dense<0.000000e+00> : vector<32x128xf32>
    %141 = tpu.matmul %102, %140, %cst_67 {dimension_numbers = #tpu.dot_dimension_numbers<[1], [0], [0], [1], [0, 0, 1, 1], [], []>} : vector<32x16xbf16>, vector<16x128xbf16>, vector<32x128xf32> -> vector<32x128xf32>
    %142 = vector.broadcast %113 : vector<32x1xf32> to vector<32x128xf32>
    %143 = arith.addf %141, %142 : vector<32x128xf32>
    %c128_i32 = arith.constant 128 : i32
    %144 = arith.muli %arg1, %c128_i32 : i32
    %145 = tpu.iota {dimensions = array<i32: 1>} : vector<1x128xi32>
    %146 = vector.broadcast %144 : i32 to vector<1x128xi32>
    %147 = arith.addi %146, %145 : vector<1x128xi32>
    %c200_i32 = arith.constant 200 : i32
    %148 = vector.broadcast %c200_i32 : i32 to vector<1x128xi32>
    %149 = arith.cmpi slt, %147, %148 : vector<1x128xi32>
    %cst_68 = arith.constant 0xFF800000 : f32
    %150 = vector.shape_cast %149 : vector<1x128xi1> to vector<1x128xi1>
    %151 = vector.broadcast %150 : vector<1x128xi1> to vector<32x128xi1>
    %152 = vector.broadcast %cst_68 : f32 to vector<32x128xf32>
    %153 = arith.select %151, %143, %152 : vector<32x128xi1>, vector<32x128xf32>
    %c0_69 = arith.constant 0 : index
    %c0_70 = arith.constant 0 : index
    %154 = vector.load %arg7[%c0_69, %c0_70] : memref<32x1xf32, #tpu.memory_space<vmem>>, vector<32x1xf32>
    %cst_71 = arith.constant dense<0xFF800000> : vector<32xf32>
    %155 = vector.multi_reduction <maximumf>, %153, %cst_71 [1] : vector<32x128xf32> to vector<32xf32>
    %156 = vector.shape_cast %155 : vector<32xf32> to vector<32x1xf32>
    %157 = arith.maximumf %154, %156 : vector<32x1xf32>
    %c0_72 = arith.constant 0 : index
    %c0_73 = arith.constant 0 : index
    %158 = vector.load %arg7[%c0_72, %c0_73] : memref<32x1xf32, #tpu.memory_space<vmem>>, vector<32x1xf32>
    tpu.vector_store %arg7[%c0_72, %c0_73], %157 {strides = array<i32>} : memref<32x1xf32, #tpu.memory_space<vmem>>, vector<32x1xf32>,
    %c1_i32 = arith.constant 1 : i32
    %159 = arith.cmpi eq, %arg1, %c1_i32 : i32
    %160 = arith.extui %159 : i1 to i32
    %c0_i32_74 = arith.constant 0 : i32
    %161 = arith.cmpi ne, %160, %c0_i32_74 : i32
    scf.if %161 {
      %c5_75 = arith.constant 5 : index
      %c0_76 = arith.constant 0 : index
      %c0_77 = arith.constant 0 : index
      %162 = vector.load %arg4[%c5_75, %c0_76, %c0_77] : memref<7x32x32xbf16, #tpu.memory_space<vmem>>, vector<1x32x32xbf16>
      %163 = vector.shape_cast %162 : vector<1x32x32xbf16> to vector<32x32xbf16>
      %c6_78 = arith.constant 6 : index
      %c0_79 = arith.constant 0 : index
      %c0_80 = arith.constant 0 : index
      %164 = vector.load %arg4[%c6_78, %c0_79, %c0_80] : memref<7x32x32xbf16, #tpu.memory_space<vmem>>, vector<1x32x32xbf16>
      %165 = vector.shape_cast %164 : vector<1x32x32xbf16> to vector<32x32xbf16>
      %c12 = arith.constant 12 : index
      %c0_81 = arith.constant 0 : index
      %c0_82 = arith.constant 0 : index
      %166 = vector.load %arg5[%c12, %c0_81, %c0_82] : memref<16x32x1xf32, #tpu.memory_space<vmem>>, vector<1x32x1xf32>
      %167 = vector.shape_cast %166 : vector<1x32x1xf32> to vector<32x1xf32>
      %c13 = arith.constant 13 : index
      %c0_83 = arith.constant 0 : index
      %c0_84 = arith.constant 0 : index
      %168 = vector.load %arg5[%c13, %c0_83, %c0_84] : memref<16x32x1xf32, #tpu.memory_space<vmem>>, vector<1x32x1xf32>
      %169 = vector.shape_cast %168 : vector<1x32x1xf32> to vector<32x1xf32>
      %c14 = arith.constant 14 : index
      %c0_85 = arith.constant 0 : index
      %c0_86 = arith.constant 0 : index
      %170 = vector.load %arg5[%c14, %c0_85, %c0_86] : memref<16x32x1xf32, #tpu.memory_space<vmem>>, vector<1x32x1xf32>
      %171 = vector.shape_cast %170 : vector<1x32x1xf32> to vector<32x1xf32>
      %c15 = arith.constant 15 : index
      %c0_87 = arith.constant 0 : index
      %c0_88 = arith.constant 0 : index
      %172 = vector.load %arg5[%c15, %c0_87, %c0_88] : memref<16x32x1xf32, #tpu.memory_space<vmem>>, vector<1x32x1xf32>
      %173 = vector.shape_cast %172 : vector<1x32x1xf32> to vector<32x1xf32>
      %c0_89 = arith.constant 0 : index
      %c0_90 = arith.constant 0 : index
      %174 = vector.load %arg7[%c0_89, %c0_90] : memref<32x1xf32, #tpu.memory_space<vmem>>, vector<32x1xf32>
      %175 = vector.shape_cast %174 : vector<32x1xf32> to vector<32x1xf32>
      %176 = vector.broadcast %175 : vector<32x1xf32> to vector<32x128xf32>
      %177 = arith.truncf %176 : vector<32x128xf32> to vector<32x128xbf16>
      %cst_91 = arith.constant dense<0.000000e+00> : vector<32x128xf32>
      %178 = tpu.matmul %163, %177, %cst_91 {dimension_numbers = #tpu.dot_dimension_numbers<[1], [0], [0], [1], [0, 0, 1, 1], [], []>} : vector<32x32xbf16>, vector<32x128xbf16>, vector<32x128xf32> -> vector<32x128xf32>
      %179 = vector.broadcast %167 : vector<32x1xf32> to vector<32x128xf32>
      %180 = arith.addf %178, %179 : vector<32x128xf32>
      %cst_92 = arith.constant dense<0.000000e+00> : vector<128xf32>
      %181 = vector.multi_reduction <add>, %180, %cst_92 [0] : vector<32x128xf32> to vector<128xf32>
      %182 = vector.shape_cast %181 : vector<128xf32> to vector<1x128xf32>
      %cst_93 = arith.constant 3.125000e-02 : f32
      %183 = vector.broadcast %cst_93 : f32 to vector<1x128xf32>
      %184 = arith.mulf %182, %183 : vector<1x128xf32>
      %185 = vector.broadcast %184 : vector<1x128xf32> to vector<32x128xf32>
      %186 = arith.subf %180, %185 : vector<32x128xf32>
      %187 = arith.mulf %186, %186 : vector<32x128xf32>
      %cst_94 = arith.constant dense<0.000000e+00> : vector<128xf32>
      %188 = vector.multi_reduction <add>, %187, %cst_94 [0] : vector<32x128xf32> to vector<128xf32>
      %189 = vector.shape_cast %188 : vector<128xf32> to vector<1x128xf32>
      %cst_95 = arith.constant 3.125000e-02 : f32
      %190 = vector.broadcast %cst_95 : f32 to vector<1x128xf32>
      %191 = arith.mulf %189, %190 : vector<1x128xf32>
      %cst_96 = arith.constant 9.99999974E-6 : f32
      %192 = vector.broadcast %cst_96 : f32 to vector<1x128xf32>
      %193 = arith.addf %191, %192 : vector<1x128xf32>
      %194 = math.rsqrt %193 : vector<1x128xf32>
      %195 = vector.broadcast %194 : vector<1x128xf32> to vector<32x128xf32>
      %196 = arith.mulf %186, %195 : vector<32x128xf32>
      %197 = vector.broadcast %169 : vector<32x1xf32> to vector<32x128xf32>
      %198 = arith.mulf %196, %197 : vector<32x128xf32>
      %199 = vector.broadcast %171 : vector<32x1xf32> to vector<32x128xf32>
      %200 = arith.addf %198, %199 : vector<32x128xf32>
      %cst_97 = arith.constant 0.000000e+00 : f32
      %201 = vector.broadcast %cst_97 : f32 to vector<32x128xf32>
      %202 = arith.maximumf %200, %201 : vector<32x128xf32>
      %203 = arith.truncf %202 : vector<32x128xf32> to vector<32x128xbf16>
      %cst_98 = arith.constant dense<0.000000e+00> : vector<32x128xf32>
      %204 = tpu.matmul %165, %203, %cst_98 {dimension_numbers = #tpu.dot_dimension_numbers<[1], [0], [0], [1], [0, 0, 1, 1], [], []>} : vector<32x32xbf16>, vector<32x128xbf16>, vector<32x128xf32> -> vector<32x128xf32>
      %205 = vector.broadcast %173 : vector<32x1xf32> to vector<32x128xf32>
      %206 = arith.addf %204, %205 : vector<32x128xf32>
      %207 = vector.extract_strided_slice %206 {offsets = [0, 0], sizes = [32, 1], strides = [1, 1]} : vector<32x128xf32> to vector<32x1xf32>
      %208 = vector.shape_cast %207 : vector<32x1xf32> to vector<1x32x1xf32>
      %c0_99 = arith.constant 0 : index
      %c0_100 = arith.constant 0 : index
      %c0_101 = arith.constant 0 : index
      %209 = vector.load %arg6[%c0_99, %c0_100, %c0_101] : memref<1x32x1xf32, #tpu.memory_space<vmem>>, vector<1x32x1xf32>
      tpu.vector_store %arg6[%c0_99, %c0_100, %c0_101], %208 {strides = array<i32>} : memref<1x32x1xf32, #tpu.memory_space<vmem>>, vector<1x32x1xf32>,
    } else {
    }
    return
  }
  func.func @transform_0(%arg0: i32, %arg1: i32) -> (i32, i32, i32) {
    %c0_i32 = arith.constant 0 : i32
    %c0_i32_0 = arith.constant 0 : i32
    return %arg0, %c0_i32, %arg1 : i32, i32, i32
  }
  func.func @transform_1(%arg0: i32, %arg1: i32) -> (i32, i32) {
    %c0_i32 = arith.constant 0 : i32
    %c0_i32_0 = arith.constant 0 : i32
    %c0_i32_1 = arith.constant 0 : i32
    return %c0_i32, %c0_i32_0 : i32, i32
  }
  func.func @transform_2(%arg0: i32, %arg1: i32) -> (i32, i32, i32) {
    %c0_i32 = arith.constant 0 : i32
    %c0_i32_0 = arith.constant 0 : i32
    %c0_i32_1 = arith.constant 0 : i32
    %c0_i32_2 = arith.constant 0 : i32
    return %c0_i32, %c0_i32_0, %c0_i32_1 : i32, i32, i32
  }
  func.func @transform_3(%arg0: i32, %arg1: i32) -> (i32, i32, i32) {
    %c0_i32 = arith.constant 0 : i32
    %c0_i32_0 = arith.constant 0 : i32
    %c0_i32_1 = arith.constant 0 : i32
    %c0_i32_2 = arith.constant 0 : i32
    return %c0_i32, %c0_i32_0, %c0_i32_1 : i32, i32, i32
  }
  func.func @transform_4(%arg0: i32, %arg1: i32) -> (i32, i32, i32) {
    %c0_i32 = arith.constant 0 : i32
    %c0_i32_0 = arith.constant 0 : i32
    %c0_i32_1 = arith.constant 0 : i32
    return %arg0, %c0_i32, %c0_i32_0 : i32, i32, i32
  }
}

</mosaic_0001>

<bundles_post_ra>
// kernel: tpu_custom_call.1
= control target key start
LH: loop header
LB: loop body
LE: loop exit
PB: predicated region body
PF: predicated region fallthrough
CT: control target
= control target key end

     0   :  { %s1425_s15 = smov 0   ;;  %s1427_s16 = smov 0   ;;  %s1690_s0 = inlined_call_operand.vmem [shape: f32[2,3,256], index: 0, kind: input, shape index: {}]   ;;  %s1691_s1 = inlined_call_operand.vmem [shape: bf16[16,3], index: 1, kind: input, shape index: {}]   ;;  %s1692_s2 = inlined_call_operand.vmem [shape: bf16[7,32,32], index: 2, kind: input, shape index: {}]   ;;  %s1693_s3 = inlined_call_operand.vmem [shape: f32[16,32,1], index: 3, kind: input, shape index: {}]   ;;  %s1694_s4 = inlined_call_operand.vmem [shape: f32[2,32,1], index: 4, kind: output, shape index: {}]  }
   0x1   :  { %s1429_s17 = smov 0   ;;  %s1431_s18 = smov 0  }
   0x2   :  { %s1433_s19 = smov 0  }
   0x3 LB: > { %s23_s20 = sadd.s32 1, %s1386_s17  ;;  %s26_s21 = sadd.s32 1, %s1390_s18  ;;  %s1394_s19 = sphi %s1433_s19, %s14_s19   ;;  %s1390_s18 = sphi %s1431_s18, %s1698_s18   ;;  %s1386_s17 = sphi %s1429_s17, %s1697_s17   ;;  %s1382_s16 = sphi %s1427_s16, %s1696_s16   ;;  %s1378_s15 = sphi %s1425_s15, %s1695_s15  }
   0x4   : > { %p24_p0 = scmp.ge.s32.totalorder %s23_s20, 2  ;;  %p1131_p1 = scmp.ge.s32.totalorder %s1394_s19, 1 }
   0x5   : > { %p179_p2 = scmp.lt.s32.totalorder %s1394_s19, 5 }
   0x6   : > { %s1700_s20 = smov (%p24_p0, %s23_s20), 0  ;;  %s1702_s21 = smov (!%p24_p0, %s26_s21), %s1390_s18 }
   0x7   : > { %p180_p3 = pnand %p1131_p1, %p179_p2  ;;  %p28_p4 = scmp.ge.s32.totalorder %s1702_s21, 2 }
   0x8   : > { %p208_p5 = scmp.lt.s32.totalorder (!%p180_p3), %s1382_s16, 1  ;;  %p210_p6 = scmp.lt.s32.totalorder (!%p180_p3), %s1378_s15, 1 }
   0x9   : > { %s1704_s21 = smov (%p28_p4, %s1702_s21), 0  ;;  %183 = sbr.rel (%p180_p3) target bundleno = 1759 (0x6df), region = 36 }
   0xa   : > { %p1136_p7 = scmp.ne.s32.totalorder (!%p180_p3), %s1378_s15, 0 }
   0xe   : > { %s1706_s16 = smov (!%p208_p5, %s1382_s16), 1 }
   0xf   : > { %s211_s22 = scalar_select %p210_p6, %s1378_s15, 1 }
  0x10   : > { %s1132_s23 = sshll.u32 %s1706_s16, 1  ;;  %s1270_s24 = sshll.u32 %s1706_s16, 5 }
  0x11   : > { %s213_s25 = sadd.s32 %s1132_s23, %s211_s22  ;;  %s1462_s28 = scalar_lea.vmem %s1694_s4, %s1270_s24 }
  0x12   : > { %s1133_s29 = sshll.u32 %s213_s25, 2  ;;  %225 = sbr.rel (%p1136_p7) target bundleno = 28 (0x1c), region = 40 }
  0x13   : > { %s215_s6 = scalar_lea.vmem %s1690_s0, %s1133_s29 }
  0x17   : > { %vm226_vm0 = vcmask 7168   ;;  %v1396_v0 = vmov -inf  }
  0x18   : > { %227 = vst.msk [vmem:[#allocation2] sm:$0xff] %vm226_vm0, %v1396_v0 }
  0x19   : > { %228 = vst.msk [vmem:[#allocation2 + $0x8] sm:$0xff] %vm226_vm0, %v1396_v0 }
  0x1a   : > { %229 = vst.msk [vmem:[#allocation2 + $0x10] sm:$0xff] %vm226_vm0, %v1396_v0 }
  0x1b   : > { %230 = vst.msk [vmem:[#allocation2 + $0x18] sm:$0xff] %vm226_vm0, %v1396_v0 }
  0x1c PF: > { %v238_v1 = vld [vmem:[%s1693_s3] sm:$0xff]  ;;  %vm271_vm1 = vcmask 1040384   ;;  %vm272_vm2 = vcmask 1041408   ;;  %v1397_v3 = vmov 0   ;;  %v1398_v6 = vmov 65535   ;;  %v239_v12 = vld [vmem:[%s1693_s3 + $0x8] sm:$0xff] }
  0x1d   : > { %v231_v2 = vld [vmem:[%s215_s6] sm:$0x7]  ;;  %1332 = vset.pattern.permute.xlu0 %v1397_v3  ;;  %1333 = vset.pattern.permute.xlu1 %v1397_v3  ;;  %v273_v7 = vsel %vm271_vm1, 4294967295, %v1398_v6  ;;  %vm267_vm3 = vcmask 23552   ;;  %v1138_v13 = vld [vmem:[%s1693_s3 + $0x28] sm:$0xff]  ;;  %v1143_v15 = vld [vmem:[%s1693_s3 + $0x70] sm:$0xff] }
  0x1e   : > { %v251_v4 = vpack.c.bf16 %v231_v2, %v231_v2  ;;  %v1137_v5 = vld [vmem:[%s1693_s3 + $0x20] sm:$0xff]  ;;  %254 = vperm.xlu0 %1332, %v238_v1   ;;  %v274_v8 = vsel %vm272_vm2, %v273_v7, 0  ;;  %1334 = vset.pattern.permute.xlu2 %v1397_v3  ;;  %v1140_v14 = vld [vmem:[%s1693_s3 + $0x48] sm:$0xff]  ;;  %v1144_v16 = vld [vmem:[%s1693_s3 + $0x78] sm:$0xff]  ;;  %vm382_vm7 = vcmask 130048   ;;  %vm447_vm8 = vcmask 261120  }
  0x1f   : > { %327 = vperm.xlu1 %1333, %v1137_v5   ;;  %v1139_v9 = vld [vmem:[%s1693_s3 + $0x40] sm:$0xff]  ;;  %v1142_v18 = vld [vmem:[%s1693_s3 + $0x68] sm:$0xff]  ;;  %v1174_v25 = vld [vmem:[%s1693_s3 + $0xf0] sm:$0xff]  ;;  %s1222_s9 = sshll.u32 %s1378_s15, 7  ;;  %vm779_vm0 = vcmask 7168   ;;  %p1223_p8 = scmp.ne.s32.totalorder %s1378_s15, 1 }
  0x20   : > { %v276_v10 = vand.u32 %v274_v8, %v251_v4  ;;  %339 = vperm.xlu2 %1334, %v1139_v9   ;;  %v1271_v11 = vld [vmem:[%s1691_s1] sm:$0xff]  ;;  %v1167_v20 = vld [vmem:[%s1693_s3 + $0x88] sm:$0xff]  ;;  %v1175_v26 = vld [vmem:[%s1693_s3 + $0xf8] sm:$0xff] }
  0x21   : > { %v1141_v17 = vld [vmem:[%s1693_s3 + $0x60] sm:$0xff]  ;;  %v1169_v22 = vld [vmem:[%s1693_s3 + $0xa8] sm:$0xff]  ;;  %v1205_v37 = vld [vmem:[%s1693_s3 + $0x170] sm:$0xff] }
  0x22   : > { %285 = vmatpush.bf16.msra.mxu0 %v276_v10  ;;  %v1166_v19 = vld [vmem:[%s1693_s3 + $0x80] sm:$0xff]  ;;  %v1171_v24 = vld [vmem:[%s1693_s3 + $0xc8] sm:$0xff]  ;;  %v1206_v38 = vld [vmem:[%s1693_s3 + $0x178] sm:$0xff] }
  0x23   : > { %v1168_v21 = vld [vmem:[%s1693_s3 + $0xa0] sm:$0xff]  ;;  %v1173_v28 = vld [vmem:[%s1693_s3 + $0xe8] sm:$0xff] }
  0x24   : > { %v1170_v23 = vld [vmem:[%s1693_s3 + $0xc0] sm:$0xff]  ;;  %v1198_v30 = vld [vmem:[%s1693_s3 + $0x108] sm:$0xff] }
  0x25   : > { %1149 = vmatmul.msk.bf16.vlgmr.msra.gmra.mxu0 %vm267_vm3, %v1271_v11  ;;  %v1172_v27 = vld [vmem:[%s1693_s3 + $0xe0] sm:$0xff]  ;;  %v1200_v32 = vld [vmem:[%s1693_s3 + $0x128] sm:$0xff] }
  0x26   : > { %259 = vperm.xlu0 %1332, %v239_v12   ;;  %v1197_v29 = vld [vmem:[%s1693_s3 + $0x100] sm:$0xff]  ;;  %v1202_v34 = vld [vmem:[%s1693_s3 + $0x148] sm:$0xff] }
  0x27   : > { %332 = vperm.xlu1 %1333, %v1138_v13   ;;  %v1199_v31 = vld [vmem:[%s1693_s3 + $0x120] sm:$0xff]  ;;  %v1204_v36 = vld [vmem:[%s1693_s3 + $0x168] sm:$0xff] }
  0x28   : > { %344 = vperm.xlu2 %1334, %v1140_v14   ;;  %v1201_v33 = vld [vmem:[%s1693_s3 + $0x140] sm:$0xff] }
  0x29   : > { %v1203_v35 = vld [vmem:[%s1693_s3 + $0x160] sm:$0xff] }
  0x2e   : > { %364 = vperm.xlu0 %1332, %v1143_v15  }
  0x2f   : > { %369 = vperm.xlu1 %1333, %v1144_v16  }
  0x30   : > { %354 = vperm.xlu2 %1334, %v1141_v17  }
  0x36   : > { %359 = vperm.xlu0 %1332, %v1142_v18  }
  0x37   : > { %434 = vperm.xlu1 %1333, %v1166_v19  }
  0x38   : > { %439 = vperm.xlu2 %1334, %v1167_v20  }
  0x3e   : > { %500 = vperm.xlu0 %1332, %v1168_v21  }
  0x3f   : > { %505 = vperm.xlu1 %1333, %v1169_v22   ;;  %v1272_v22 = vld [vmem:[%s1692_s2] sm:$0xff] }
  0x40   : > { %512 = vperm.xlu2 %1334, %v1170_v23   ;;  %v1273_v23 = vld [vmem:[%s1692_s2 + $0x8] sm:$0xff] }
  0x46   : > { %517 = vperm.xlu0 %1332, %v1171_v24  }
  0x47   : > { %537 = vperm.xlu1 %1333, %v1174_v25  }
  0x48   : > { %542 = vperm.xlu2 %1334, %v1175_v26  }
  0x4e   : > { %527 = vperm.xlu0 %1332, %v1172_v27  }
  0x4f   : > { %532 = vperm.xlu1 %1333, %v1173_v28  }
  0x50   : > { %606 = vperm.xlu2 %1334, %v1197_v29  }
  0x56   : > { %611 = vperm.xlu0 %1332, %v1198_v30  }
  0x57   : > { %671 = vperm.xlu1 %1333, %v1199_v31  }
  0x58   : > { %676 = vperm.xlu2 %1334, %v1200_v32  }
  0x5e   : > { %683 = vperm.xlu0 %1332, %v1201_v33  }
  0x5f   : > { %688 = vperm.xlu1 %1333, %v1202_v34  }
  0x60   : > { %698 = vperm.xlu2 %1334, %v1203_v35  }
  0x66   : > { %703 = vperm.xlu0 %1332, %v1204_v36  }
  0x67   : > { %708 = vperm.xlu1 %1333, %v1205_v37  }
  0x68   : > { %713 = vperm.xlu2 %1334, %v1206_v38   ;;  %v1274_v38 = vld [vmem:[%s1692_s2 + $0x10] sm:$0xff] }
  0x7a   : > { %v340_v6 = vpop.permute.xlu2 %339 }
  0x82   : > { %v345_v16 = vpop.permute.xlu2 %344 }
  0x8a   : > { %v355_v35 = vpop.permute.xlu2 %354 }
  0x90   : > { %v255_v39 = vpop.permute.xlu0 %254 }
  0x91   : > { %v328_v4 = vpop.permute.xlu1 %327 }
  0x98   : > { %v260_v41 = vpop.permute.xlu0 %259 }
  0x99   : > { %v333_v13 = vpop.permute.xlu1 %332 }
  0xa0   : > { %v365_v26 = vpop.permute.xlu0 %364 }
  0xa1   : > { %v370_v28 = vpop.permute.xlu1 %369 }
  0xa2   : > { %v287_v40 = vpop.f32.mrf.mxu0 }
  0xa3   : > { %v288_v43 = vadd.f32 %v287_v40, %v255_v39  ;;  %v440_v40 = vpop.permute.xlu2 %439 }
  0xa8   : > { %v360_v32 = vpop.permute.xlu0 %359 }
  0xaa   : > { %v289_v42 = vpop.f32.mrf.mxu0 }
  0xab   : > { %v290_v44 = vadd.f32 %v289_v42, %v260_v41  ;;  %v435_v41 = vpop.permute.xlu1 %434 }
  0xad   : > { %v292_v45 = vadd.f32 %v290_v44, %v288_v43 }
  0xaf   : > { %v293_v46 = vrot.slane %v292_v45, 4 }
  0xb1   : > { %v294_v47 = vadd.f32 %v293_v46, %v292_v45 }
  0xb3   : > { %v295_v48 = vrot.slane %v294_v47, 2 }
  0xb5   : > { %v296_v49 = vadd.f32 %v295_v48, %v294_v47 }
  0xb7   : > { %v297_v50 = vrot.slane %v296_v49, 1 }
  0xb9   : > { %v298_v51 = vadd.f32 %v297_v50, %v296_v49 }
  0xbb   : > { %v299_v52 = vmul.f32 0.0625, %v298_v51 }
  0xbd   : > { %v300_v53 = vsub.f32 %v288_v43, %v299_v52  ;;  %v301_v54 = vsub.f32 %v290_v44, %v299_v52 }
  0xbf   : > { %v302_v55 = vmul.f32 %v300_v53, %v300_v53  ;;  %v303_v56 = vmul.f32 %v301_v54, %v301_v54 }
  0xc1   : > { %v304_v57 = vadd.f32 %v303_v56, %v302_v55 }
  0xc3   : > { %v305_v58 = vrot.slane %v304_v57, 4 }
  0xc5   : > { %v306_v59 = vadd.f32 %v305_v58, %v304_v57 }
  0xc7   : > { %v307_v60 = vrot.slane %v306_v59, 2 }
  0xc9   : > { %v308_v61 = vadd.f32 %v307_v60, %v306_v59 }
  0xcb   : > { %v309_v62 = vrot.slane %v308_v61, 1 }
  0xcd   : > { %v310_v63 = vadd.f32 %v309_v62, %v308_v61 }
  0xcf   : > { %v311_v0 = vmul.f32 0.0625, %v310_v63 }
  0xd1   : > { %v312_v1 = vadd.f32 1e-05, %v311_v0 }
  0xd3   : > { %1335 = vrsqrt.f32 %v312_v1  ;;  %vm319_vm5 = vweird.f32 %v312_v1 }
  0xd9   : > { %v1336_v2 = vpop.eup %1335 }
  0xda   : > { %v314_v3 = vmul.f32 %v1336_v2, %v312_v1  ;;  %vm320_vm4 = vweird.f32 %v1336_v2 }
  0xdb   : > { %vm321_vm6 = vmor %vm319_vm5, %vm320_vm4 }
  0xdc   : > { %v315_v5 = vmul.f32 %v1336_v2, %v314_v3 }
  0xde   : > { %v316_v7 = vmul.f32 0.5, %v315_v5  ;;  %v501_v5 = vpop.permute.xlu0 %500 }
  0xe0   : > { %v317_v8 = vsub.f32 1.5, %v316_v7 }
  0xe2   : > { %v318_v9 = vmul.f32 %v1336_v2, %v317_v8 }
  0xe4   : > { %v322_v10 = vsel %vm321_vm6, %v1336_v2, %v318_v9 }
  0xe5   : > { %v324_v11 = vmul.f32 %v322_v10, %v301_v54  ;;  %v323_v12 = vmul.f32 %v322_v10, %v300_v53 }
  0xe7   : > { %v335_v14 = vmul.f32 %v328_v4, %v323_v12  ;;  %v336_v15 = vmul.f32 %v333_v13, %v324_v11  ;;  %v506_v12 = vpop.permute.xlu1 %505 }
  0xe9   : > { %v347_v17 = vadd.f32 %v340_v6, %v335_v14  ;;  %v348_v18 = vadd.f32 %v345_v16, %v336_v15  ;;  %v513_v15 = vpop.permute.xlu2 %512  ;;  %v518_v16 = vpop.permute.xlu0 %517 }
  0xeb   : > { %v349_v19 = vmax.f32 %v347_v17, 0.0  ;;  %v350_v20 = vmax.f32 %v348_v18, 0.0 }
  0xed   : > { %v351_v21 = vpack.c.bf16 %v350_v20, %v349_v19 }
  0xef   : > { %396 = vmatpush.bf16.msra.mxu1 %v351_v21 }
  0xf2   : > { %1158 = vmatmul.msk.bf16.vlgmr.msra.gmra.mxu1 %vm382_vm7, %v1272_v22  ;;  %v1275_v22 = vld [vmem:[%s1692_s2 + $0x20] sm:$0xff] }
 0x102   : > { %1159 = vmatmul.msk.bf16.gmra.mxu1 %vm382_vm7, %v1273_v23  ;;  %v1276_v23 = vld [vmem:[%s1692_s2 + $0x28] sm:$0xff] }
 0x16f   : > { %v398_v24 = vpop.f32.mrf.mxu1 }
 0x170   : > { %v399_v36 = vadd.f32 %v398_v24, %v355_v35  ;;  %v528_v35 = vpop.permute.xlu0 %527 }
 0x177   : > { %v400_v25 = vpop.f32.mrf.mxu1 }
 0x178   : > { %v401_v33 = vadd.f32 %v400_v25, %v360_v32 }
 0x17a   : > { %v430_v37 = vpack.c.bf16 %v401_v33, %v399_v36 }
 0x17f   : > { %v403_v27 = vpop.f32.mrf.mxu1 }
 0x180   : > { %v404_v30 = vadd.f32 %v403_v27, %v365_v26  ;;  %v538_v26 = vpop.permute.xlu1 %537 }
 0x187   : > { %v405_v29 = vpop.f32.mrf.mxu1 }
 0x188   : > { %v406_v31 = vadd.f32 %v405_v29, %v370_v28  ;;  %v543_v28 = vpop.permute.xlu2 %542  ;;  %v533_v32 = vpop.permute.xlu1 %532 }
 0x18a   : > { %v431_v34 = vpack.c.bf16 %v406_v31, %v404_v30 }
 0x18c   : > { %457 = vmatpush.bf16.msrb.mxu0 %v431_v34 }
 0x190   : > { %458 = vmatpush.bf16.msrb.mxu0 %v430_v37 }
 0x193   : > { %1180 = vmatmul.msk.bf16.vlgmr.msrb.gmra.mxu0 %vm447_vm8, %v1274_v38  ;;  %v1277_v38 = vld [vmem:[%s1692_s2 + $0x30] sm:$0xff] }
 0x210   : > { %v460_v39 = vpop.f32.mrf.mxu0 }
 0x211   : > { %v461_v43 = vadd.f32 %v460_v39, %v435_v41  ;;  %v612_v41 = vpop.permute.xlu0 %611 }
 0x218   : > { %v462_v42 = vpop.f32.mrf.mxu0 }
 0x219   : > { %v463_v44 = vadd.f32 %v462_v42, %v440_v40  ;;  %v607_v40 = vpop.permute.xlu2 %606 }
 0x21b   : > { %v465_v45 = vadd.f32 %v463_v44, %v461_v43 }
 0x21d   : > { %v466_v46 = vrot.slane %v465_v45, 4 }
 0x21f   : > { %v467_v47 = vadd.f32 %v466_v46, %v465_v45 }
 0x221   : > { %v468_v48 = vrot.slane %v467_v47, 2 }
 0x223   : > { %v469_v49 = vadd.f32 %v468_v48, %v467_v47 }
 0x225   : > { %v470_v50 = vrot.slane %v469_v49, 1 }
 0x227   : > { %v471_v51 = vadd.f32 %v470_v50, %v469_v49 }
 0x229   : > { %v472_v52 = vmul.f32 0.0625, %v471_v51 }
 0x22b   : > { %v473_v53 = vsub.f32 %v461_v43, %v472_v52  ;;  %v474_v54 = vsub.f32 %v463_v44, %v472_v52 }
 0x22d   : > { %v475_v55 = vmul.f32 %v473_v53, %v473_v53  ;;  %v476_v56 = vmul.f32 %v474_v54, %v474_v54 }
 0x22f   : > { %v477_v57 = vadd.f32 %v476_v56, %v475_v55 }
 0x231   : > { %v478_v58 = vrot.slane %v477_v57, 4 }
 0x233   : > { %v479_v59 = vadd.f32 %v478_v58, %v477_v57 }
 0x235   : > { %v480_v60 = vrot.slane %v479_v59, 2 }
 0x237   : > { %v481_v61 = vadd.f32 %v480_v60, %v479_v59 }
 0x239   : > { %v482_v62 = vrot.slane %v481_v61, 1 }
 0x23b   : > { %v483_v63 = vadd.f32 %v482_v62, %v481_v61 }
 0x23d   : > { %v484_v0 = vmul.f32 0.0625, %v483_v63 }
 0x23f   : > { %v485_v1 = vadd.f32 1e-05, %v484_v0 }
 0x241   : > { %1337 = vrsqrt.f32 %v485_v1  ;;  %vm492_vm10 = vweird.f32 %v485_v1 }
 0x247   : > { %v1338_v2 = vpop.eup %1337 }
 0x248   : > { %v487_v3 = vmul.f32 %v1338_v2, %v485_v1  ;;  %vm493_vm9 = vweird.f32 %v1338_v2 }
 0x249   : > { %vm494_vm11 = vmor %vm492_vm10, %vm493_vm9 }
 0x24a   : > { %v488_v4 = vmul.f32 %v1338_v2, %v487_v3 }
 0x24c   : > { %v489_v6 = vmul.f32 0.5, %v488_v4 }
 0x24e   : > { %v490_v7 = vsub.f32 1.5, %v489_v6 }
 0x250   : > { %v491_v8 = vmul.f32 %v1338_v2, %v490_v7 }
 0x252   : > { %v495_v9 = vsel %vm494_vm11, %v1338_v2, %v491_v8 }
 0x253   : > { %v497_v10 = vmul.f32 %v495_v9, %v474_v54  ;;  %v496_v11 = vmul.f32 %v495_v9, %v473_v53 }
 0x255   : > { %v508_v13 = vmul.f32 %v501_v5, %v496_v11  ;;  %v509_v14 = vmul.f32 %v506_v12, %v497_v10  ;;  %v672_v5 = vpop.permute.xlu1 %671  ;;  %v677_v12 = vpop.permute.xlu2 %676 }
 0x257   : > { %v520_v17 = vadd.f32 %v513_v15, %v508_v13  ;;  %v521_v18 = vadd.f32 %v518_v16, %v509_v14  ;;  %v684_v15 = vpop.permute.xlu0 %683 }
 0x259   : > { %v522_v19 = vmax.f32 %v520_v17, 0.0  ;;  %v523_v20 = vmax.f32 %v521_v18, 0.0 }
 0x25b   : > { %v524_v21 = vpack.c.bf16 %v523_v20, %v522_v19 }
 0x25d   : > { %568 = vmatpush.bf16.msra.mxu3 %v524_v21  ;;  %v689_v16 = vpop.permute.xlu1 %688 }
 0x260   : > { %1189 = vmatmul.msk.bf16.vlgmr.msra.gmra.mxu3 %vm382_vm7, %v1275_v22  ;;  %v1278_v22 = vld [vmem:[%s1692_s2 + $0x40] sm:$0xff] }
 0x270   : > { %1190 = vmatmul.msk.bf16.gmra.mxu3 %vm382_vm7, %v1276_v23  ;;  %v1279_v23 = vld [vmem:[%s1692_s2 + $0x48] sm:$0xff] }
 0x2e3   : > { %v570_v24 = vpop.f32.mrf.mxu3 }
 0x2e4   : > { %v571_v36 = vadd.f32 %v570_v24, %v528_v35  ;;  %v752_v24 = vlaneseq }
 0x2eb   : > { %v572_v25 = vpop.f32.mrf.mxu3 }
 0x2ec   : > { %v573_v33 = vadd.f32 %v572_v25, %v533_v32  ;;  %v753_v25 = vand.u32 127, %v752_v24  ;;  %v704_v32 = vpop.permute.xlu0 %703 }
 0x2ee   : > { %v602_v37 = vpack.c.bf16 %v573_v33, %v571_v36  ;;  %v709_v36 = vpop.permute.xlu1 %708 }
 0x2f3   : > { %v575_v27 = vpop.f32.mrf.mxu3 }
 0x2f4   : > { %v576_v30 = vadd.f32 %v575_v27, %v538_v26  ;;  %v754_v26 = vstv %s1222_s9 }
 0x2f5   : > { %v755_v27 = vadd.s32 %v754_v26, %v753_v25 }
 0x2f7   : > { %vm756_vm15 = vcmp.lt.s32.totalorder %v755_v27, 200 }
 0x2fb   : > { %v577_v29 = vpop.f32.mrf.mxu3 }
 0x2fc   : > { %v578_v31 = vadd.f32 %v577_v29, %v543_v28  ;;  %v699_v28 = vpop.permute.xlu2 %698 }
 0x2fe   : > { %v603_v34 = vpack.c.bf16 %v578_v31, %v576_v30 }
 0x300   : > { %628 = vmatpush.bf16.msra.mxu0 %v603_v34 }
 0x304   : > { %629 = vmatpush.bf16.msra.mxu0 %v602_v37 }
 0x307   : > { %1211 = vmatmul.msk.bf16.vlgmr.msra.gmra.mxu0 %vm447_vm8, %v1277_v38 }
 0x384   : > { %v631_v39 = vpop.f32.mrf.mxu0 }
 0x385   : > { %v632_v43 = vadd.f32 %v631_v39, %v607_v40  ;;  %v714_v40 = vpop.permute.xlu2 %713 }
 0x38c   : > { %v633_v42 = vpop.f32.mrf.mxu0 }
 0x38d   : > { %v634_v44 = vadd.f32 %v633_v42, %v612_v41 }
 0x38f   : > { %v636_v45 = vadd.f32 %v634_v44, %v632_v43 }
 0x391   : > { %v637_v46 = vrot.slane %v636_v45, 4 }
 0x393   : > { %v638_v47 = vadd.f32 %v637_v46, %v636_v45 }
 0x395   : > { %v639_v48 = vrot.slane %v638_v47, 2 }
 0x397   : > { %v640_v49 = vadd.f32 %v639_v48, %v638_v47  ;;  %v764_v47 = vld [vmem:[#allocation2 + $0x8] sm:$0xff] }
 0x399   : > { %v641_v50 = vrot.slane %v640_v49, 1 }
 0x39b   : > { %v642_v51 = vadd.f32 %v641_v50, %v640_v49  ;;  %v765_v50 = vld [vmem:[#allocation2 + $0x10] sm:$0xff] }
 0x39d   : > { %v643_v52 = vmul.f32 0.0625, %v642_v51 }
 0x39f   : > { %v644_v53 = vsub.f32 %v632_v43, %v643_v52  ;;  %v645_v54 = vsub.f32 %v634_v44, %v643_v52  ;;  %v763_v44 = vld [vmem:[#allocation2] sm:$0xff] }
 0x3a1   : > { %v646_v55 = vmul.f32 %v644_v53, %v644_v53  ;;  %v647_v56 = vmul.f32 %v645_v54, %v645_v54 }
 0x3a3   : > { %v648_v57 = vadd.f32 %v647_v56, %v646_v55 }
 0x3a5   : > { %v649_v58 = vrot.slane %v648_v57, 4 }
 0x3a7   : > { %v650_v59 = vadd.f32 %v649_v58, %v648_v57 }
 0x3a9   : > { %v651_v60 = vrot.slane %v650_v59, 2 }
 0x3ab   : > { %v652_v61 = vadd.f32 %v651_v60, %v650_v59 }
 0x3ad   : > { %v653_v62 = vrot.slane %v652_v61, 1 }
 0x3af   : > { %v654_v63 = vadd.f32 %v653_v62, %v652_v61 }
 0x3b1   : > { %v655_v0 = vmul.f32 0.0625, %v654_v63 }
 0x3b3   : > { %v656_v1 = vadd.f32 1e-05, %v655_v0 }
 0x3b5   : > { %1339 = vrsqrt.f32 %v656_v1  ;;  %vm663_vm13 = vweird.f32 %v656_v1 }
 0x3bb   : > { %v1340_v2 = vpop.eup %1339 }
 0x3bc   : > { %v658_v3 = vmul.f32 %v1340_v2, %v656_v1  ;;  %vm664_vm12 = vweird.f32 %v1340_v2 }
 0x3bd   : > { %vm665_vm14 = vmor %vm663_vm13, %vm664_vm12 }
 0x3be   : > { %v659_v4 = vmul.f32 %v1340_v2, %v658_v3 }
 0x3c0   : > { %v660_v6 = vmul.f32 0.5, %v659_v4 }
 0x3c2   : > { %v661_v7 = vsub.f32 1.5, %v660_v6 }
 0x3c4   : > { %v662_v8 = vmul.f32 %v1340_v2, %v661_v7 }
 0x3c6   : > { %v666_v9 = vsel %vm665_vm14, %v1340_v2, %v662_v8 }
 0x3c7   : > { %v668_v10 = vmul.f32 %v666_v9, %v645_v54  ;;  %v667_v11 = vmul.f32 %v666_v9, %v644_v53  ;;  %v766_v53 = vld [vmem:[#allocation2 + $0x18] sm:$0xff] }
 0x3c9   : > { %v679_v13 = vmul.f32 %v672_v5, %v667_v11  ;;  %v680_v14 = vmul.f32 %v677_v12, %v668_v10 }
 0x3cb   : > { %v691_v17 = vadd.f32 %v684_v15, %v679_v13  ;;  %v692_v18 = vadd.f32 %v689_v16, %v680_v14 }
 0x3cd   : > { %v693_v19 = vmax.f32 %v691_v17, 0.0  ;;  %v694_v20 = vmax.f32 %v692_v18, 0.0 }
 0x3cf   : > { %v695_v21 = vpack.c.bf16 %v694_v20, %v693_v19 }
 0x3d1   : > { %739 = vmatpush.bf16.msra.mxu2 %v695_v21 }
 0x3d4   : > { %1220 = vmatmul.msk.bf16.vlgmr.msra.gmra.mxu2 %vm382_vm7, %v1278_v22 }
 0x3e4   : > { %1221 = vmatmul.msk.bf16.gmra.mxu2 %vm382_vm7, %v1279_v23 }
 0x457   : > { %v741_v29 = vpop.f32.mrf.mxu2 }
 0x458   : > { %v742_v30 = vadd.f32 %v741_v29, %v699_v28 }
 0x45a   : > { %v759_v31 = vsel %vm756_vm15, %v742_v30, -inf }
 0x45b   : > { %767 = vmax.xlane.f32.xlu0 %v759_v31 }
 0x45f   : > { %v743_v33 = vpop.f32.mrf.mxu2 }
 0x460   : > { %v744_v34 = vadd.f32 %v743_v33, %v704_v32 }
 0x462   : > { %v760_v35 = vsel %vm756_vm15, %v744_v34, -inf }
 0x463   : > { %769 = vmax.xlane.f32.xlu1 %v760_v35 }
 0x467   : > { %v746_v37 = vpop.f32.mrf.mxu2 }
 0x468   : > { %v747_v38 = vadd.f32 %v746_v37, %v709_v36 }
 0x46a   : > { %v761_v39 = vsel %vm756_vm15, %v747_v38, -inf }
 0x46b   : > { %771 = vmax.xlane.f32.xlu2 %v761_v39 }
 0x46f   : > { %v748_v41 = vpop.f32.mrf.mxu2 }
 0x470   : > { %v749_v42 = vadd.f32 %v748_v41, %v714_v40 }
 0x472   : > { %v762_v43 = vsel %vm756_vm15, %v749_v42, -inf }
 0x473   : > { %773 = vmax.xlane.f32.xlu2 %v762_v43 }
 0x4ce   : > { %v768_v45 = vpop.xlane.xlu0 %767 }
 0x4cf   : > { %v775_v46 = vmax.f32 %v763_v44, %v768_v45 }
 0x4d1   : > { %780 = vst.msk [vmem:[#allocation2] sm:$0xff] %vm779_vm0, %v775_v46 }
 0x4d6   : > { %v770_v48 = vpop.xlane.xlu1 %769 }
 0x4d7   : > { %v776_v49 = vmax.f32 %v764_v47, %v770_v48 }
 0x4d9   : > { %781 = vst.msk [vmem:[#allocation2 + $0x8] sm:$0xff] %vm779_vm0, %v776_v49 }
 0x4de   : > { %v772_v51 = vpop.xlane.xlu2 %771 }
 0x4df   : > { %v777_v52 = vmax.f32 %v765_v50, %v772_v51 }
 0x4e1   : > { %782 = vst.msk [vmem:[#allocation2 + $0x10] sm:$0xff] %vm779_vm0, %v777_v52 }
 0x4e5   : > { %787 = sbr.rel (%p1223_p8) target bundleno = 1759 (0x6df), region = 44 }
 0x4e6   : > { %v774_v54 = vpop.xlane.xlu2 %773 }
 0x4e7   : > { %v778_v55 = vmax.f32 %v766_v53, %v774_v54 }
 0x4e9   : > { %783 = vst.msk [vmem:[#allocation2 + $0x18] sm:$0xff] %vm779_vm0, %v778_v55 }
 0x4ea   : > { %v820_v56 = vld [vmem:[#allocation2 + $0x10] sm:$0xff]  ;;  %v1399_v58 = vmov 0   ;;  %v818_v60 = vld [vmem:[#allocation2] sm:$0xff]  ;;  %v819_v61 = vld [vmem:[#allocation2 + $0x8] sm:$0xff] }
 0x4eb   : > { %1341 = vset.pattern.permute.xlu0 %v1399_v58  ;;  %1352 = vset.pattern.permute.xlu1 %v1399_v58  ;;  %v1347_v62 = vpack.i.bf16 %v819_v61, %v818_v60  ;;  %v1232_v63 = vld [vmem:[%s1693_s3 + $0x180] sm:$0xff]  ;;  %v1238_v0 = vld [vmem:[%s1693_s3 + $0x1b0] sm:$0xff]  ;;  %v1233_v1 = vld [vmem:[%s1693_s3 + $0x188] sm:$0xff] }
 0x4ec   : > { %1353 = vset.pattern.permute.xlu2 %v1399_v58  ;;  %846 = vperm.xlu1 %1352, %v1232_v63   ;;  %v1243_v2 = vld [vmem:[%s1693_s3 + $0x1d8] sm:$0xff]  ;;  %v1240_v3 = vld [vmem:[%s1693_s3 + $0x1c0] sm:$0xff]  ;;  %v1245_v4 = vld [vmem:[%s1693_s3 + $0x1e8] sm:$0xff] }
 0x4ed   : > { %v1239_v5 = vld [vmem:[%s1693_s3 + $0x1b8] sm:$0xff]  ;;  %v1236_v6 = vld [vmem:[%s1693_s3 + $0x1a0] sm:$0xff]  ;;  %v1234_v7 = vld [vmem:[%s1693_s3 + $0x190] sm:$0xff] }
 0x4ee   : > { %856 = vperm.xlu2 %1353, %v1234_v7   ;;  %v1241_v8 = vld [vmem:[%s1693_s3 + $0x1c8] sm:$0xff]  ;;  %v1235_v9 = vld [vmem:[%s1693_s3 + $0x198] sm:$0xff]  ;;  %v1246_v10 = vld [vmem:[%s1693_s3 + $0x1f0] sm:$0xff] }
 0x4ef   : > { %v1242_v12 = vld [vmem:[%s1693_s3 + $0x1d0] sm:$0xff]  ;;  %v1237_v17 = vld [vmem:[%s1693_s3 + $0x1a8] sm:$0xff]  ;;  %v1281_v22 = vld [vmem:[%s1692_s2 + $0x58] sm:$0xff] }
 0x4f0   : > { %v821_v57 = vld [vmem:[#allocation2 + $0x18] sm:$0xff]  ;;  %v1280_v21 = vld [vmem:[%s1692_s2 + $0x50] sm:$0xff]  ;;  %v1244_v23 = vld [vmem:[%s1693_s3 + $0x1e0] sm:$0xff] }
 0x4f1   : > { %v1342_v59 = vpack.i.bf16 %v821_v57, %v820_v56  ;;  %v1247_v24 = vld [vmem:[%s1693_s3 + $0x1f8] sm:$0xff] }
 0x4f3   : > { %1343 = vperm.xlu0 %1341, %v1342_v59  }
 0x4f4   : > { %851 = vperm.xlu1 %1352, %v1233_v1  }
 0x4f6   : > { %861 = vperm.xlu2 %1353, %v1235_v9  }
 0x4fb   : > { %1348 = vperm.xlu0 %1341, %v1347_v62  }
 0x4fc   : > { %959 = vperm.xlu1 %1352, %v1239_v5  }
 0x4fe   : > { %978 = vperm.xlu2 %1353, %v1242_v12  }
 0x503   : > { %954 = vperm.xlu0 %1341, %v1238_v0  }
 0x504   : > { %944 = vperm.xlu1 %1352, %v1236_v6  }
 0x506   : > { %949 = vperm.xlu2 %1353, %v1237_v17  }
 0x50b   : > { %983 = vperm.xlu0 %1341, %v1243_v2  }
 0x50c   : > { %973 = vperm.xlu1 %1352, %v1241_v8  }
 0x50e   : > { %998 = vperm.xlu2 %1353, %v1244_v23  }
 0x513   : > { %968 = vperm.xlu0 %1341, %v1240_v3  }
 0x514   : > { %1008 = vperm.xlu1 %1352, %v1246_v10  }
 0x516   : > { %1013 = vperm.xlu2 %1353, %v1247_v24  }
 0x51b   : > { %1003 = vperm.xlu0 %1341, %v1245_v4  }
 0x548   : > { %v857_v27 = vpop.permute.xlu2 %856 }
 0x550   : > { %v862_v35 = vpop.permute.xlu2 %861 }
 0x558   : > { %v979_v6 = vpop.permute.xlu2 %978 }
 0x55e   : > { %v847_v25 = vpop.permute.xlu1 %846 }
 0x565   : > { %v1344_v11 = vpop.permute.xlu0 %1343 }
 0x566   : > { %v1346_v13 = vunpack.i.h.bf16 %v1344_v11  ;;  %v1345_v14 = vunpack.i.l.bf16 %v1344_v11  ;;  %v852_v29 = vpop.permute.xlu1 %851 }
 0x568   : > { %v843_v15 = vpack.c.bf16 %v1346_v13, %v1345_v14 }
 0x56a   : > { %886 = vmatpush.bf16.msra.mxu0 %v843_v15  ;;  %1284 = vmatpush.bf16.msra.mxu2 %v843_v15 }
 0x56d   : > { %v1349_v16 = vpop.permute.xlu0 %1348 }
 0x56e   : > { %v1351_v18 = vunpack.i.h.bf16 %v1349_v16  ;;  %v1350_v19 = vunpack.i.l.bf16 %v1349_v16  ;;  %v960_v3 = vpop.permute.xlu1 %959 }
 0x570   : > { %v842_v20 = vpack.c.bf16 %v1351_v18, %v1350_v19  ;;  %v950_v18 = vpop.permute.xlu2 %949 }
 0x572   : > { %887 = vmatpush.bf16.msra.mxu0 %v842_v20  ;;  %1285 = vmatpush.bf16.msra.mxu2 %v842_v20 }
 0x575   : > { %1256 = vmatmul.msk.bf16.vlgmr.msra.gmra.mxu0 %vm447_vm8, %v1280_v21  ;;  %1257 = vmatmul.msk.bf16.vlgmr.msra.gmra.mxu2 %vm447_vm8, %v1281_v22  ;;  %v955_v2 = vpop.permute.xlu0 %954 }
 0x576   : > { %v945_v9 = vpop.permute.xlu1 %944 }
 0x57d   : > { %v984_v8 = vpop.permute.xlu0 %983 }
 0x57e   : > { %v974_v24 = vpop.permute.xlu1 %973 }
 0x585   : > { %v969_v23 = vpop.permute.xlu0 %968 }
 0x5f2   : > { %v889_v26 = vpop.f32.mrf.mxu0 }
 0x5f3   : > { %v890_v31 = vadd.f32 %v889_v26, %v847_v25 }
 0x5f8   : > { %v894_v28 = vpop.f32.mrf.mxu2 }
 0x5f9   : > { %v895_v34 = vadd.f32 %v894_v28, %v857_v27 }
 0x5fa   : > { %v891_v30 = vpop.f32.mrf.mxu0 }
 0x5fb   : > { %v892_v32 = vadd.f32 %v891_v30, %v852_v29 }
 0x5fd   : > { %v899_v33 = vadd.f32 %v892_v32, %v890_v31 }
 0x5ff   : > { %v900_v38 = vadd.f32 %v899_v33, %v895_v34 }
 0x600   : > { %v896_v36 = vpop.f32.mrf.mxu2 }
 0x601   : > { %v897_v37 = vadd.f32 %v896_v36, %v862_v35  ;;  %v1282_v35 = vld [vmem:[%s1692_s2 + $0x60] sm:$0xff]  ;;  %v1283_v36 = vld [vmem:[%s1692_s2 + $0x68] sm:$0xff] }
 0x603   : > { %v901_v39 = vadd.f32 %v900_v38, %v897_v37 }
 0x605   : > { %v902_v40 = vrot.slane %v901_v39, 4 }
 0x607   : > { %v903_v41 = vadd.f32 %v902_v40, %v901_v39  ;;  %v1009_v40 = vpop.permute.xlu1 %1008 }
 0x609   : > { %v904_v42 = vrot.slane %v903_v41, 2 }
 0x60b   : > { %v905_v43 = vadd.f32 %v904_v42, %v903_v41 }
 0x60d   : > { %v906_v44 = vrot.slane %v905_v43, 1 }
 0x60f   : > { %v907_v45 = vadd.f32 %v906_v44, %v905_v43  ;;  %v1004_v43 = vpop.permute.xlu0 %1003 }
 0x611   : > { %v908_v46 = vmul.f32 0.03125, %v907_v45 }
 0x613   : > { %v909_v47 = vsub.f32 %v890_v31, %v908_v46  ;;  %v910_v48 = vsub.f32 %v892_v32, %v908_v46  ;;  %v911_v49 = vsub.f32 %v895_v34, %v908_v46  ;;  %v912_v50 = vsub.f32 %v897_v37, %v908_v46  ;;  %v999_v37 = vpop.permute.xlu2 %998 }
 0x615   : > { %v913_v51 = vmul.f32 %v909_v47, %v909_v47  ;;  %v914_v52 = vmul.f32 %v910_v48, %v910_v48  ;;  %v915_v53 = vmul.f32 %v911_v49, %v911_v49  ;;  %v916_v55 = vmul.f32 %v912_v50, %v912_v50 }
 0x617   : > { %v917_v54 = vadd.f32 %v914_v52, %v913_v51 }
 0x619   : > { %v918_v56 = vadd.f32 %v917_v54, %v915_v53 }
 0x61b   : > { %v919_v57 = vadd.f32 %v918_v56, %v916_v55  ;;  %v1014_v46 = vpop.permute.xlu2 %1013 }
 0x61d   : > { %v920_v58 = vrot.slane %v919_v57, 4 }
 0x61f   : > { %v921_v59 = vadd.f32 %v920_v58, %v919_v57 }
 0x621   : > { %v922_v60 = vrot.slane %v921_v59, 2 }
 0x623   : > { %v923_v61 = vadd.f32 %v922_v60, %v921_v59 }
 0x625   : > { %v924_v62 = vrot.slane %v923_v61, 1 }
 0x627   : > { %v925_v63 = vadd.f32 %v924_v62, %v923_v61 }
 0x629   : > { %v926_v0 = vmul.f32 0.03125, %v925_v63 }
 0x62b   : > { %v927_v1 = vadd.f32 1e-05, %v926_v0 }
 0x62d   : > { %1354 = vrsqrt.f32 %v927_v1  ;;  %vm934_vm2 = vweird.f32 %v927_v1 }
 0x633   : > { %v1355_v4 = vpop.eup %1354 }
 0x634   : > { %v929_v5 = vmul.f32 %v1355_v4, %v927_v1  ;;  %vm935_vm1 = vweird.f32 %v1355_v4 }
 0x635   : > { %vm936_vm3 = vmor %vm934_vm2, %vm935_vm1 }
 0x636   : > { %v930_v7 = vmul.f32 %v1355_v4, %v929_v5 }
 0x638   : > { %v931_v10 = vmul.f32 0.5, %v930_v7 }
 0x63a   : > { %v932_v11 = vsub.f32 1.5, %v931_v10 }
 0x63c   : > { %v933_v12 = vmul.f32 %v1355_v4, %v932_v11 }
 0x63e   : > { %v937_v13 = vsel %vm936_vm3, %v1355_v4, %v933_v12 }
 0x63f   : > { %v941_v14 = vmul.f32 %v937_v13, %v912_v50  ;;  %v940_v15 = vmul.f32 %v937_v13, %v911_v49  ;;  %v938_v16 = vmul.f32 %v937_v13, %v909_v47  ;;  %v939_v17 = vmul.f32 %v937_v13, %v910_v48 }
 0x641   : > { %v964_v19 = vmul.f32 %v955_v2, %v940_v15  ;;  %v965_v20 = vmul.f32 %v960_v3, %v941_v14  ;;  %v962_v21 = vmul.f32 %v945_v9, %v938_v16  ;;  %v963_v22 = vmul.f32 %v950_v18, %v939_v17 }
 0x643   : > { %v988_v25 = vadd.f32 %v979_v6, %v964_v19  ;;  %v989_v26 = vadd.f32 %v984_v8, %v965_v20  ;;  %v986_v27 = vadd.f32 %v969_v23, %v962_v21  ;;  %v987_v28 = vadd.f32 %v974_v24, %v963_v22 }
 0x645   : > { %v992_v29 = vmax.f32 %v988_v25, 0.0  ;;  %v993_v30 = vmax.f32 %v989_v26, 0.0  ;;  %v990_v32 = vmax.f32 %v986_v27, 0.0  ;;  %v991_v33 = vmax.f32 %v987_v28, 0.0 }
 0x647   : > { %v995_v31 = vpack.c.bf16 %v993_v30, %v992_v29  ;;  %v994_v34 = vpack.c.bf16 %v991_v33, %v990_v32 }
 0x649   : > { %1038 = vmatpush.bf16.msra.mxu1 %v995_v31  ;;  %1286 = vmatpush.bf16.msra.mxu3 %v995_v31 }
 0x64d   : > { %1039 = vmatpush.bf16.msra.mxu1 %v994_v34  ;;  %1287 = vmatpush.bf16.msra.mxu3 %v994_v34 }
 0x650   : > { %1266 = vmatmul.msk.bf16.vlgmr.msra.gmra.mxu1 %vm447_vm8, %v1282_v35  ;;  %1267 = vmatmul.msk.bf16.vlgmr.msra.gmra.mxu3 %vm447_vm8, %v1283_v36 }
 0x6cd   : > { %v1041_v38 = vpop.f32.mrf.mxu1 }
 0x6ce   : > { %v1042_v39 = vadd.f32 %v1041_v38, %v999_v37 }
 0x6d0   : > { %1051 = vst.msk [vmem:[%s1462_s28] sm:$0xff] %vm779_vm0, %v1042_v39 }
 0x6d3   : > { %v1046_v41 = vpop.f32.mrf.mxu3 }
 0x6d4   : > { %v1047_v42 = vadd.f32 %v1046_v41, %v1009_v40 }
 0x6d5   : > { %v1043_v44 = vpop.f32.mrf.mxu1 }
 0x6d6   : > { %1053 = vst.msk [vmem:[%s1462_s28 + $0x10] sm:$0xff] %vm779_vm0, %v1047_v42  ;;  %v1044_v45 = vadd.f32 %v1043_v44, %v1004_v43 }
 0x6d8   : > { %1052 = vst.msk [vmem:[%s1462_s28 + $0x8] sm:$0xff] %vm779_vm0, %v1044_v45 }
 0x6db   : > { %v1048_v47 = vpop.f32.mrf.mxu3 }
 0x6dc   : > { %v1049_v48 = vadd.f32 %v1048_v47, %v1014_v46 }
 0x6de   : > { %1054 = vst.msk [vmem:[%s1462_s28 + $0x18] sm:$0xff] %vm779_vm0, %v1049_v48 }
 0x6df PF: > { %s14_s19 = sadd.s32 1, %s1394_s19   ;;  %s1695_s15 = smov %s1386_s17 }
 0x6e0   : > { %p11_p9 = scmp.ge.s32.totalorder %s14_s19, 6   ;;  %s1696_s16 = smov %s1390_s18 }
 0x6e1   : > { %s1697_s17 = smov %s1700_s20  ;;  %s1698_s18 = smov %s1704_s21 }
 0x6e2   :  { %13 = sbr.rel (!%p11_p9) target bundleno = 3 (0x3), region = 95 }

</bundles_post_ra>
